<compile_context>
chip_gen: v6e
topology: v6e:2x2x1
jax: 0.10.0
libtpu: 0.0.40
codegen_flags: <defaults>
</compile_context>

<pallas_src>
import numpy as np
import jax
import jax.numpy as jnp
from jax import lax
from jax.experimental import pallas as pl
from jax.experimental.pallas import tpu as pltpu


def _round_up(x, m):
    return ((x + m - 1) // m) * m


def _blstm_kernel(lens_ref, x_ref, wih_ref, b_ref, whh_ref, out_ref,
                  pre_ref, h_ref, c_ref):
    """Bidirectional LSTM recurrence with fused input projection.

    grid = (2, n_chunks):
      axis 0 = direction (0 fwd, 1 bwd)  -> "parallel"  (independent recurrences)
      axis 1 = time chunk                -> "arbitrary" (state carried in VMEM)

    x_ref   : (Tc, B_pad, E)  input chunk (chunk order reversed for bwd via
              the BlockSpec index_map).
    wih_ref : (E, 4H)  this direction's W_ih^T   (resident, tiny).
    b_ref   : (1, 4H)  this direction's b_ih + b_hh.
    whh_ref : (H, 4H)  this direction's W_hh^T.
    out_ref : (Tc, B_pad, H) hidden states for this chunk.
    pre_ref : (Tc, B_pad, 4H) VMEM scratch holding the chunk pre-activations.
    h_ref/c_ref : (2, B_pad, H) VMEM state scratch, slot d per direction,
              persisted across the chunk axis.
    PyTorch LSTM gate order: i, f, g, o.
    """
    d = pl.program_id(0)            # direction
    cidx = pl.program_id(1)         # chunk counter (per direction)
    n_chunks = pl.num_programs(1)

    Tc, B, E = x_ref.shape
    H = whh_ref.shape[0]
    G = whh_ref.shape[1]

    # Fresh state at the start of this direction's sweep.
    @pl.when(cidx == 0)
    def _():
        h_ref[d] = jnp.zeros((B, H), jnp.float32)
        c_ref[d] = jnp.zeros((B, H), jnp.float32)

    # ---- fused input projection for the whole chunk: one MXU matmul --------
    x2 = x_ref[...].reshape(Tc * B, E)
    pre = jnp.dot(x2, wih_ref[...], preferred_element_type=jnp.float32)
    pre_ref[...] = (pre + b_ref[...]).reshape(Tc, B, G)

    lens = lens_ref[...]            # (B, 1) int32
    whh = whh_ref[...]              # (H, 4H), hoisted out of the step loop

    # Which chunk of global time this grid step covers (reverse order for bwd).
    chunk = (1 - d) * cidx + d * (n_chunks - 1 - cidx)
    chunk_base = chunk * Tc

    def step(s, carry):
        h, c = carry
        # local time index inside the chunk: fwd walks 0..Tc-1, bwd Tc-1..0
        local = (1 - d) * s + d * (Tc - 1 - s)
        t_glob = chunk_base + local

        gates = pre_ref[local] + jnp.dot(h, whh,
                                         preferred_element_type=jnp.float32)
        # One full-width (B, 4H) sigmoid (single EUP issue over a full vreg),
        # tanh only on the g quarter.
        sig = jax.nn.sigmoid(gates)
        i_g = sig[:, 0 * H:1 * H]
        f_g = sig[:, 1 * H:2 * H]
        o_g = sig[:, 3 * H:4 * H]
        g_g = jnp.tanh(gates[:, 2 * H:3 * H])

        c_new = f_g * c + i_g * g_g
        h_new = o_g * jnp.tanh(c_new)

        mask = lens > t_glob                       # (B, 1) bool
        h = jnp.where(mask, h_new, h)
        c = jnp.where(mask, c_new, c)
        out_ref[local] = jnp.where(mask, h_new, 0.0)
        return h, c

    h_fin, c_fin = lax.fori_loop(0, Tc, step, (h_ref[d], c_ref[d]),
                                 unroll=min(Tc, 8))
    h_ref[d] = h_fin
    c_ref[d] = c_fin


def blstm_encoder_forward(sent, sent_len, params, *, time_chunk=128):
    """sent: (T, B, E) float32 (time-major, like nn.LSTM default);
    sent_len: 1-D numpy int array of length B.
    Returns (max(sent_len), B, 2H) — pad_packed_sequence(...)[0] semantics,
    in the ORIGINAL batch order (the module's sort/unsort is a no-op on the
    returned tensor)."""
    T, B, E = sent.shape
    H = params["whh_f"].shape[1]        # weight_hh: (4H, H)
    G = 4 * H

    sent_len_np = np.asarray(sent_len)
    max_len = int(sent_len_np.max())

    Tc = max(1, min(int(time_chunk), max_len))
    n_chunks = -(-max_len // Tc)
    T_pad = n_chunks * Tc
    B_pad = _round_up(B, 8)             # fill f32 vreg sublanes

    # Pad x only (tiny E-wide tensor); padded time steps / batch rows are
    # masked out via per-row lengths.  No pre-activation tensor is built here.
    x = jnp.pad(sent[:max_len].astype(jnp.float32),
                ((0, T_pad - max_len), (0, B_pad - B), (0, 0)))

    # Per-direction weights, transposed so the kernel does  v @ W^T.
    wih = jnp.stack([params["wih_f"].T, params["wih_b"].T], axis=0)   # (2,E,4H)
    whh = jnp.stack([params["whh_f"].T, params["whh_b"].T], axis=0)   # (2,H,4H)
    bias = jnp.stack([(params["bih_f"] + params["bhh_f"])[None, :],
                      (params["bih_b"] + params["bhh_b"])[None, :]], 0)  # (2,1,4H)

    lens = jnp.zeros((B_pad, 1), jnp.int32).at[:B, 0].set(
        jnp.asarray(sent_len_np, jnp.int32))   # padded rows get len 0 -> masked

    def x_map(dd, cc):
        # forward direction walks chunks 0..n-1, backward walks n-1..0
        return ((1 - dd) * cc + dd * (n_chunks - 1 - cc), 0, 0)

    def out_map(dd, cc):
        return (dd, (1 - dd) * cc + dd * (n_chunks - 1 - cc), 0, 0)

    in_specs = [
        pl.BlockSpec((B_pad, 1), lambda dd, cc: (0, 0)),          # lengths
        pl.BlockSpec((Tc, B_pad, E), x_map),                      # x chunk
        pl.BlockSpec((None, E, G), lambda dd, cc: (dd, 0, 0)),    # W_ih^T per dir
        pl.BlockSpec((None, 1, G), lambda dd, cc: (dd, 0, 0)),    # bias per dir
        pl.BlockSpec((None, H, G), lambda dd, cc: (dd, 0, 0)),    # W_hh^T per dir
    ]
    out_specs = pl.BlockSpec((None, Tc, B_pad, H), out_map)

    out = pl.pallas_call(
        _blstm_kernel,
        grid=(2, n_chunks),
        in_specs=in_specs,
        out_specs=out_specs,
        out_shape=jax.ShapeDtypeStruct((2, T_pad, B_pad, H), jnp.float32),
        scratch_shapes=[pltpu.VMEM((Tc, B_pad, G), jnp.float32),   # pre-acts
                        pltpu.VMEM((2, B_pad, H), jnp.float32),    # h state
                        pltpu.VMEM((2, B_pad, H), jnp.float32)],   # c state
        compiler_params=pltpu.CompilerParams(
            # direction axis is independent (2 TCs on v7x); time chunks carry
            # state in scratch and MUST stay "arbitrary".
            dimension_semantics=("parallel", "arbitrary")),
    )(lens, x, wih, bias, whh)

    out_f = out[0, :max_len, :B]                                   # (L, B, H)
    out_b = out[1, :max_len, :B]
    return jnp.concatenate([out_f, out_b], axis=-1)                # (L, B, 2H)


# ---------------------------------------------------------------------------
# Pure-JAX reference (lax.scan, per-step projection) for numerical check.
# ---------------------------------------------------------------------------
def _lstm_ref_dir(x, lens, wih_t, whh_t, b, reverse):
    T, B, E = x.shape
    H = whh_t.shape[0]

    def step(carry, inp):
        h, c = carry
        xt, t = inp
        gates = xt @ wih_t + h @ whh_t + b
        i = jax.nn.sigmoid(gates[:, :H])
        f = jax.nn.sigmoid(gates[:, H:2 * H])
        g = jnp.tanh(gates[:, 2 * H:3 * H])
        o = jax.nn.sigmoid(gates[:, 3 * H:])
        c_new = f * c + i * g
        h_new = o * jnp.tanh(c_new)
        mask = lens[:, None] > t
        return ((jnp.where(mask, h_new, h), jnp.where(mask, c_new, c)),
                jnp.where(mask, h_new, 0.0))

    ts = jnp.arange(T)
    xs = (x[::-1], ts[::-1]) if reverse else (x, ts)
    init = (jnp.zeros((B, H), jnp.float32), jnp.zeros((B, H), jnp.float32))
    _, outs = jax.lax.scan(step, init, xs)
    return outs[::-1] if reverse else outs


def blstm_encoder_reference(sent, sent_len, params):
    lens = jnp.asarray(np.asarray(sent_len), jnp.int32)
    of = _lstm_ref_dir(sent, lens, params["wih_f"].T, params["whh_f"].T,
                       (params["bih_f"] + params["bhh_f"])[None], reverse=False)
    ob = _lstm_ref_dir(sent, lens, params["wih_b"].T, params["whh_b"].T,
                       (params["bih_b"] + params["bhh_b"])[None], reverse=True)
    out = jnp.concatenate([of, ob], axis=-1)
    return out[:int(np.max(np.asarray(sent_len)))]


def init_params(key, word_emb_dim, hidden_size):
    """Deterministic stand-in for nn.LSTM default init: U(-1/sqrt(H), 1/sqrt(H))."""
    H, E = hidden_size, word_emb_dim
    k = 1.0 / np.sqrt(H)
    names_shapes = [
        ("wih_f", (4 * H, E)), ("whh_f", (4 * H, H)),
        ("bih_f", (4 * H,)), ("bhh_f", (4 * H,)),
        ("wih_b", (4 * H, E)), ("whh_b", (4 * H, H)),
        ("bih_b", (4 * H,)), ("bhh_b", (4 * H,)),
    ]
    keys = jax.random.split(key, len(names_shapes))
    return {name: jax.random.uniform(kk, shape, jnp.float32, -k, k)
            for kk, (name, shape) in zip(keys, names_shapes)}


if __name__ == "__main__":
    # Small shapes: word_emb_dim=16, hidden_size=32, T=8 time steps, batch=4.
    # sent_len max = 7 < T exercises the max_len grid trim + time padding.
    T, B, E, H = 8, 4, 16, 32
    key = jax.random.PRNGKey(0)
    k_x, k_p = jax.random.split(key)

    sent = jax.random.normal(k_x, (T, B, E), jnp.float32)     # (seq, batch, emb)
    sent_len = np.array([7, 5, 3, 6], dtype=np.int64)         # variable lengths
    params = init_params(k_p, E, H)

    ref = jax.block_until_ready(blstm_encoder_reference(sent, sent_len, params))

    # time_chunk=4 exercises multi-chunk state carry (2 chunks per direction);
    # time_chunk=128 exercises the single whole-sequence chunk path.
    # Tolerance covers matmul-precision / transcendental-approximation
    # differences between the Mosaic and XLA lowerings (real bugs are >>1e-2).
    out = None
    for tc in (4, 128):
        out = blstm_encoder_forward(sent, sent_len, params, time_chunk=tc)
        out = jax.block_until_ready(out)                      # (max_len, B, 2H)
        assert out.shape == (int(np.max(sent_len)), B, 2 * H)
        np.testing.assert_allclose(np.asarray(out), np.asarray(ref),
                                   rtol=2e-3, atol=2e-3)

    print("KERNEL_OK")
</pallas_src>

<mosaic_0001>
module attributes {stable_mosaic.version = 11 : i64} {
  func.func @_blstm_kernel(%arg0: i32, %arg1: i32, %arg2: memref<8x1xi32, #tpu.memory_space<vmem>>, %arg3: memref<4x8x16xf32, #tpu.memory_space<vmem>>, %arg4: memref<1x16x128xf32, #tpu.memory_space<vmem>>, %arg5: memref<1x1x128xf32, #tpu.memory_space<vmem>>, %arg6: memref<1x32x128xf32, #tpu.memory_space<vmem>>, %arg7: memref<1x4x8x32xf32, #tpu.memory_space<vmem>>, %arg8: memref<4x8x128xf32, #tpu.memory_space<vmem>>, %arg9: memref<2x8x32xf32, #tpu.memory_space<vmem>>, %arg10: memref<2x8x32xf32, #tpu.memory_space<vmem>>) attributes {dimension_semantics = [#tpu.dimension_semantics<parallel>, #tpu.dimension_semantics<arbitrary>], iteration_bounds = array<i64: 2, 2>, scalar_prefetch = 0 : i64, scratch_operands = 3 : i64, tpu.core_type = #tpu.core_type<tc>, window_params = [{pipeline_mode = #tpu.pipeline_mode<synchronous>, transform_indices = @transform_0, window_bounds = array<i64: 8, 1>}, {transform_indices = @transform_1, window_bounds = array<i64: 4, 8, 16>}, {transform_indices = @transform_2, window_bounds = array<i64: 1, 16, 128>}, {transform_indices = @transform_3, window_bounds = array<i64: 1, 1, 128>}, {transform_indices = @transform_4, window_bounds = array<i64: 1, 32, 128>}, {transform_indices = @transform_5, window_bounds = array<i64: 1, 4, 8, 32>}]} {
    %c0_i32 = arith.constant 0 : i32
    %0 = arith.cmpi eq, %arg1, %c0_i32 : i32
    %1 = arith.extui %0 : i1 to i32
    %c0_i32_0 = arith.constant 0 : i32
    %2 = arith.cmpi ne, %1, %c0_i32_0 : i32
    scf.if %2 {
      %cst_69 = arith.constant 0.000000e+00 : f32
      %205 = vector.broadcast %cst_69 : f32 to vector<8x32xf32>
      %206 = arith.index_cast %arg0 : i32 to index
      %c0_70 = arith.constant 0 : index
      %c0_71 = arith.constant 0 : index
      %207 = vector.load %arg9[%206, %c0_70, %c0_71] : memref<2x8x32xf32, #tpu.memory_space<vmem>>, vector<1x8x32xf32>
      %208 = vector.shape_cast %207 : vector<1x8x32xf32> to vector<8x32xf32>
      %209 = vector.shape_cast %205 : vector<8x32xf32> to vector<1x8x32xf32>
      tpu.vector_store %arg9[%206, %c0_70, %c0_71], %209 {strides = array<i32>} : memref<2x8x32xf32, #tpu.memory_space<vmem>>, vector<1x8x32xf32>,
      %cst_72 = arith.constant 0.000000e+00 : f32
      %210 = vector.broadcast %cst_72 : f32 to vector<8x32xf32>
      %211 = arith.index_cast %arg0 : i32 to index
      %c0_73 = arith.constant 0 : index
      %c0_74 = arith.constant 0 : index
      %212 = vector.load %arg10[%211, %c0_73, %c0_74] : memref<2x8x32xf32, #tpu.memory_space<vmem>>, vector<1x8x32xf32>
      %213 = vector.shape_cast %212 : vector<1x8x32xf32> to vector<8x32xf32>
      %214 = vector.shape_cast %210 : vector<8x32xf32> to vector<1x8x32xf32>
      tpu.vector_store %arg10[%211, %c0_73, %c0_74], %214 {strides = array<i32>} : memref<2x8x32xf32, #tpu.memory_space<vmem>>, vector<1x8x32xf32>,
    } else {
    }
    %c0 = arith.constant 0 : index
    %c0_1 = arith.constant 0 : index
    %c0_2 = arith.constant 0 : index
    %3 = vector.load %arg3[%c0, %c0_1, %c0_2] : memref<4x8x16xf32, #tpu.memory_space<vmem>>, vector<4x8x16xf32>
    %4 = vector.shape_cast %3 : vector<4x8x16xf32> to vector<32x16xf32>
    %c0_3 = arith.constant 0 : index
    %c0_4 = arith.constant 0 : index
    %c0_5 = arith.constant 0 : index
    %5 = vector.load %arg4[%c0_3, %c0_4, %c0_5] : memref<1x16x128xf32, #tpu.memory_space<vmem>>, vector<1x16x128xf32>
    %6 = vector.shape_cast %5 : vector<1x16x128xf32> to vector<16x128xf32>
    %cst = arith.constant dense<0.000000e+00> : vector<32x128xf32>
    %7 = tpu.matmul %4, %6, %cst {dimension_numbers = #tpu.dot_dimension_numbers<[1], [0], [0], [1], [0, 0, 1, 1], [], []>} : vector<32x16xf32>, vector<16x128xf32>, vector<32x128xf32> -> vector<32x128xf32>
    %c0_6 = arith.constant 0 : index
    %c0_7 = arith.constant 0 : index
    %c0_8 = arith.constant 0 : index
    %8 = vector.load %arg5[%c0_6, %c0_7, %c0_8] : memref<1x1x128xf32, #tpu.memory_space<vmem>>, vector<1x1x128xf32>
    %9 = vector.shape_cast %8 : vector<1x1x128xf32> to vector<1x128xf32>
    %10 = vector.broadcast %9 : vector<1x128xf32> to vector<32x128xf32>
    %11 = arith.addf %7, %10 : vector<32x128xf32>
    %12 = vector.shape_cast %11 : vector<32x128xf32> to vector<4x8x128xf32>
    %c0_9 = arith.constant 0 : index
    %c0_10 = arith.constant 0 : index
    %c0_11 = arith.constant 0 : index
    %13 = vector.load %arg8[%c0_9, %c0_10, %c0_11] : memref<4x8x128xf32, #tpu.memory_space<vmem>>, vector<4x8x128xf32>
    tpu.vector_store %arg8[%c0_9, %c0_10, %c0_11], %12 {strides = array<i32>} : memref<4x8x128xf32, #tpu.memory_space<vmem>>, vector<4x8x128xf32>,
    %c0_12 = arith.constant 0 : index
    %c0_13 = arith.constant 0 : index
    %14 = vector.load %arg2[%c0_12, %c0_13] : memref<8x1xi32, #tpu.memory_space<vmem>>, vector<8x1xi32>
    %c0_14 = arith.constant 0 : index
    %c0_15 = arith.constant 0 : index
    %c0_16 = arith.constant 0 : index
    %15 = vector.load %arg6[%c0_14, %c0_15, %c0_16] : memref<1x32x128xf32, #tpu.memory_space<vmem>>, vector<1x32x128xf32>
    %16 = vector.shape_cast %15 : vector<1x32x128xf32> to vector<32x128xf32>
    %c1_i32 = arith.constant 1 : i32
    %17 = arith.subi %c1_i32, %arg0 : i32
    %18 = arith.muli %17, %arg1 : i32
    %c1_i32_17 = arith.constant 1 : i32
    %19 = arith.subi %c1_i32_17, %arg1 : i32
    %20 = arith.muli %arg0, %19 : i32
    %21 = arith.addi %18, %20 : i32
    %c4_i32 = arith.constant 4 : i32
    %22 = arith.muli %21, %c4_i32 : i32
    %23 = arith.index_cast %arg0 : i32 to index
    %c0_18 = arith.constant 0 : index
    %c0_19 = arith.constant 0 : index
    %24 = vector.load %arg9[%23, %c0_18, %c0_19] : memref<2x8x32xf32, #tpu.memory_space<vmem>>, vector<1x8x32xf32>
    %25 = vector.shape_cast %24 : vector<1x8x32xf32> to vector<8x32xf32>
    %26 = arith.index_cast %arg0 : i32 to index
    %c0_20 = arith.constant 0 : index
    %c0_21 = arith.constant 0 : index
    %27 = vector.load %arg10[%26, %c0_20, %c0_21] : memref<2x8x32xf32, #tpu.memory_space<vmem>>, vector<1x8x32xf32>
    %28 = vector.shape_cast %27 : vector<1x8x32xf32> to vector<8x32xf32>
    %c0_i32_22 = arith.constant 0 : i32
    %c1_i32_23 = arith.constant 1 : i32
    %29 = arith.subi %c1_i32_23, %arg0 : i32
    %30 = arith.muli %29, %c0_i32_22 : i32
    %c3_i32 = arith.constant 3 : i32
    %31 = arith.subi %c3_i32, %c0_i32_22 : i32
    %32 = arith.muli %arg0, %31 : i32
    %33 = arith.addi %30, %32 : i32
    %34 = arith.addi %22, %33 : i32
    %35 = arith.index_cast %33 : i32 to index
    %c0_24 = arith.constant 0 : index
    %c0_25 = arith.constant 0 : index
    %36 = vector.load %arg8[%35, %c0_24, %c0_25] : memref<4x8x128xf32, #tpu.memory_space<vmem>>, vector<1x8x128xf32>
    %37 = vector.shape_cast %36 : vector<1x8x128xf32> to vector<8x128xf32>
    %cst_26 = arith.constant dense<0.000000e+00> : vector<8x128xf32>
    %38 = tpu.matmul %25, %16, %cst_26 {dimension_numbers = #tpu.dot_dimension_numbers<[1], [0], [0], [1], [0, 0, 1, 1], [], []>} : vector<8x32xf32>, vector<32x128xf32>, vector<8x128xf32> -> vector<8x128xf32>
    %39 = arith.addf %37, %38 : vector<8x128xf32>
    %40 = arith.negf %39 : vector<8x128xf32>
    %41 = math.exp %40 : vector<8x128xf32>
    %cst_27 = arith.constant 1.000000e+00 : f32
    %42 = vector.broadcast %cst_27 : f32 to vector<8x128xf32>
    %43 = arith.addf %42, %41 : vector<8x128xf32>
    %44 = arith.divf %42, %43 : vector<8x128xf32>
    %45 = vector.extract_strided_slice %44 {offsets = [0, 0], sizes = [8, 32], strides = [1, 1]} : vector<8x128xf32> to vector<8x32xf32>
    %46 = vector.extract_strided_slice %44 {offsets = [0, 32], sizes = [8, 32], strides = [1, 1]} : vector<8x128xf32> to vector<8x32xf32>
    %47 = vector.extract_strided_slice %44 {offsets = [0, 96], sizes = [8, 32], strides = [1, 1]} : vector<8x128xf32> to vector<8x32xf32>
    %48 = vector.extract_strided_slice %39 {offsets = [0, 64], sizes = [8, 32], strides = [1, 1]} : vector<8x128xf32> to vector<8x32xf32>
    %49 = math.tanh %48 : vector<8x32xf32>
    %50 = arith.mulf %46, %28 : vector<8x32xf32>
    %51 = arith.mulf %45, %49 : vector<8x32xf32>
    %52 = arith.addf %50, %51 : vector<8x32xf32>
    %53 = math.tanh %52 : vector<8x32xf32>
    %54 = arith.mulf %47, %53 : vector<8x32xf32>
    %55 = vector.broadcast %34 : i32 to vector<8x1xi32>
    %56 = arith.cmpi sgt, %14, %55 : vector<8x1xi32>
    %57 = vector.shape_cast %56 : vector<8x1xi1> to vector<8x1xi1>
    %58 = vector.broadcast %57 : vector<8x1xi1> to vector<8x32xi1>
    %59 = arith.select %58, %54, %25 : vector<8x32xi1>, vector<8x32xf32>
    %60 = vector.shape_cast %56 : vector<8x1xi1> to vector<8x1xi1>
    %61 = vector.broadcast %60 : vector<8x1xi1> to vector<8x32xi1>
    %62 = arith.select %61, %52, %28 : vector<8x32xi1>, vector<8x32xf32>
    %cst_28 = arith.constant 0.000000e+00 : f32
    %63 = vector.shape_cast %56 : vector<8x1xi1> to vector<8x1xi1>
    %64 = vector.broadcast %63 : vector<8x1xi1> to vector<8x32xi1>
    %65 = vector.broadcast %cst_28 : f32 to vector<8x32xf32>
    %66 = arith.select %64, %54, %65 : vector<8x32xi1>, vector<8x32xf32>
    %c0_29 = arith.constant 0 : index
    %67 = arith.index_cast %33 : i32 to index
    %c0_30 = arith.constant 0 : index
    %c0_31 = arith.constant 0 : index
    %68 = vector.load %arg7[%c0_29, %67, %c0_30, %c0_31] : memref<1x4x8x32xf32, #tpu.memory_space<vmem>>, vector<1x1x8x32xf32>
    %69 = vector.shape_cast %68 : vector<1x1x8x32xf32> to vector<8x32xf32>
    %70 = vector.shape_cast %66 : vector<8x32xf32> to vector<1x1x8x32xf32>
    tpu.vector_store %arg7[%c0_29, %67, %c0_30, %c0_31], %70 {strides = array<i32>} : memref<1x4x8x32xf32, #tpu.memory_space<vmem>>, vector<1x1x8x32xf32>,
    %c1_i32_32 = arith.constant 1 : i32
    %c1_i32_33 = arith.constant 1 : i32
    %71 = arith.subi %c1_i32_33, %arg0 : i32
    %72 = arith.muli %71, %c1_i32_32 : i32
    %c3_i32_34 = arith.constant 3 : i32
    %73 = arith.subi %c3_i32_34, %c1_i32_32 : i32
    %74 = arith.muli %arg0, %73 : i32
    %75 = arith.addi %72, %74 : i32
    %76 = arith.addi %22, %75 : i32
    %77 = arith.index_cast %75 : i32 to index
    %c0_35 = arith.constant 0 : index
    %c0_36 = arith.constant 0 : index
    %78 = vector.load %arg8[%77, %c0_35, %c0_36] : memref<4x8x128xf32, #tpu.memory_space<vmem>>, vector<1x8x128xf32>
    %79 = vector.shape_cast %78 : vector<1x8x128xf32> to vector<8x128xf32>
    %cst_37 = arith.constant dense<0.000000e+00> : vector<8x128xf32>
    %80 = tpu.matmul %59, %16, %cst_37 {dimension_numbers = #tpu.dot_dimension_numbers<[1], [0], [0], [1], [0, 0, 1, 1], [], []>} : vector<8x32xf32>, vector<32x128xf32>, vector<8x128xf32> -> vector<8x128xf32>
    %81 = arith.addf %79, %80 : vector<8x128xf32>
    %82 = arith.negf %81 : vector<8x128xf32>
    %83 = math.exp %82 : vector<8x128xf32>
    %cst_38 = arith.constant 1.000000e+00 : f32
    %84 = vector.broadcast %cst_38 : f32 to vector<8x128xf32>
    %85 = arith.addf %84, %83 : vector<8x128xf32>
    %86 = arith.divf %84, %85 : vector<8x128xf32>
    %87 = vector.extract_strided_slice %86 {offsets = [0, 0], sizes = [8, 32], strides = [1, 1]} : vector<8x128xf32> to vector<8x32xf32>
    %88 = vector.extract_strided_slice %86 {offsets = [0, 32], sizes = [8, 32], strides = [1, 1]} : vector<8x128xf32> to vector<8x32xf32>
    %89 = vector.extract_strided_slice %86 {offsets = [0, 96], sizes = [8, 32], strides = [1, 1]} : vector<8x128xf32> to vector<8x32xf32>
    %90 = vector.extract_strided_slice %81 {offsets = [0, 64], sizes = [8, 32], strides = [1, 1]} : vector<8x128xf32> to vector<8x32xf32>
    %91 = math.tanh %90 : vector<8x32xf32>
    %92 = arith.mulf %88, %62 : vector<8x32xf32>
    %93 = arith.mulf %87, %91 : vector<8x32xf32>
    %94 = arith.addf %92, %93 : vector<8x32xf32>
    %95 = math.tanh %94 : vector<8x32xf32>
    %96 = arith.mulf %89, %95 : vector<8x32xf32>
    %97 = vector.broadcast %76 : i32 to vector<8x1xi32>
    %98 = arith.cmpi sgt, %14, %97 : vector<8x1xi32>
    %99 = vector.shape_cast %98 : vector<8x1xi1> to vector<8x1xi1>
    %100 = vector.broadcast %99 : vector<8x1xi1> to vector<8x32xi1>
    %101 = arith.select %100, %96, %59 : vector<8x32xi1>, vector<8x32xf32>
    %102 = vector.shape_cast %98 : vector<8x1xi1> to vector<8x1xi1>
    %103 = vector.broadcast %102 : vector<8x1xi1> to vector<8x32xi1>
    %104 = arith.select %103, %94, %62 : vector<8x32xi1>, vector<8x32xf32>
    %cst_39 = arith.constant 0.000000e+00 : f32
    %105 = vector.shape_cast %98 : vector<8x1xi1> to vector<8x1xi1>
    %106 = vector.broadcast %105 : vector<8x1xi1> to vector<8x32xi1>
    %107 = vector.broadcast %cst_39 : f32 to vector<8x32xf32>
    %108 = arith.select %106, %96, %107 : vector<8x32xi1>, vector<8x32xf32>
    %c0_40 = arith.constant 0 : index
    %109 = arith.index_cast %75 : i32 to index
    %c0_41 = arith.constant 0 : index
    %c0_42 = arith.constant 0 : index
    %110 = vector.load %arg7[%c0_40, %109, %c0_41, %c0_42] : memref<1x4x8x32xf32, #tpu.memory_space<vmem>>, vector<1x1x8x32xf32>
    %111 = vector.shape_cast %110 : vector<1x1x8x32xf32> to vector<8x32xf32>
    %112 = vector.shape_cast %108 : vector<8x32xf32> to vector<1x1x8x32xf32>
    tpu.vector_store %arg7[%c0_40, %109, %c0_41, %c0_42], %112 {strides = array<i32>} : memref<1x4x8x32xf32, #tpu.memory_space<vmem>>, vector<1x1x8x32xf32>,
    %c2_i32 = arith.constant 2 : i32
    %c1_i32_43 = arith.constant 1 : i32
    %113 = arith.subi %c1_i32_43, %arg0 : i32
    %114 = arith.muli %113, %c2_i32 : i32
    %c3_i32_44 = arith.constant 3 : i32
    %115 = arith.subi %c3_i32_44, %c2_i32 : i32
    %116 = arith.muli %arg0, %115 : i32
    %117 = arith.addi %114, %116 : i32
    %118 = arith.addi %22, %117 : i32
    %119 = arith.index_cast %117 : i32 to index
    %c0_45 = arith.constant 0 : index
    %c0_46 = arith.constant 0 : index
    %120 = vector.load %arg8[%119, %c0_45, %c0_46] : memref<4x8x128xf32, #tpu.memory_space<vmem>>, vector<1x8x128xf32>
    %121 = vector.shape_cast %120 : vector<1x8x128xf32> to vector<8x128xf32>
    %cst_47 = arith.constant dense<0.000000e+00> : vector<8x128xf32>
    %122 = tpu.matmul %101, %16, %cst_47 {dimension_numbers = #tpu.dot_dimension_numbers<[1], [0], [0], [1], [0, 0, 1, 1], [], []>} : vector<8x32xf32>, vector<32x128xf32>, vector<8x128xf32> -> vector<8x128xf32>
    %123 = arith.addf %121, %122 : vector<8x128xf32>
    %124 = arith.negf %123 : vector<8x128xf32>
    %125 = math.exp %124 : vector<8x128xf32>
    %cst_48 = arith.constant 1.000000e+00 : f32
    %126 = vector.broadcast %cst_48 : f32 to vector<8x128xf32>
    %127 = arith.addf %126, %125 : vector<8x128xf32>
    %128 = arith.divf %126, %127 : vector<8x128xf32>
    %129 = vector.extract_strided_slice %128 {offsets = [0, 0], sizes = [8, 32], strides = [1, 1]} : vector<8x128xf32> to vector<8x32xf32>
    %130 = vector.extract_strided_slice %128 {offsets = [0, 32], sizes = [8, 32], strides = [1, 1]} : vector<8x128xf32> to vector<8x32xf32>
    %131 = vector.extract_strided_slice %128 {offsets = [0, 96], sizes = [8, 32], strides = [1, 1]} : vector<8x128xf32> to vector<8x32xf32>
    %132 = vector.extract_strided_slice %123 {offsets = [0, 64], sizes = [8, 32], strides = [1, 1]} : vector<8x128xf32> to vector<8x32xf32>
    %133 = math.tanh %132 : vector<8x32xf32>
    %134 = arith.mulf %130, %104 : vector<8x32xf32>
    %135 = arith.mulf %129, %133 : vector<8x32xf32>
    %136 = arith.addf %134, %135 : vector<8x32xf32>
    %137 = math.tanh %136 : vector<8x32xf32>
    %138 = arith.mulf %131, %137 : vector<8x32xf32>
    %139 = vector.broadcast %118 : i32 to vector<8x1xi32>
    %140 = arith.cmpi sgt, %14, %139 : vector<8x1xi32>
    %141 = vector.shape_cast %140 : vector<8x1xi1> to vector<8x1xi1>
    %142 = vector.broadcast %141 : vector<8x1xi1> to vector<8x32xi1>
    %143 = arith.select %142, %138, %101 : vector<8x32xi1>, vector<8x32xf32>
    %144 = vector.shape_cast %140 : vector<8x1xi1> to vector<8x1xi1>
    %145 = vector.broadcast %144 : vector<8x1xi1> to vector<8x32xi1>
    %146 = arith.select %145, %136, %104 : vector<8x32xi1>, vector<8x32xf32>
    %cst_49 = arith.constant 0.000000e+00 : f32
    %147 = vector.shape_cast %140 : vector<8x1xi1> to vector<8x1xi1>
    %148 = vector.broadcast %147 : vector<8x1xi1> to vector<8x32xi1>
    %149 = vector.broadcast %cst_49 : f32 to vector<8x32xf32>
    %150 = arith.select %148, %138, %149 : vector<8x32xi1>, vector<8x32xf32>
    %c0_50 = arith.constant 0 : index
    %151 = arith.index_cast %117 : i32 to index
    %c0_51 = arith.constant 0 : index
    %c0_52 = arith.constant 0 : index
    %152 = vector.load %arg7[%c0_50, %151, %c0_51, %c0_52] : memref<1x4x8x32xf32, #tpu.memory_space<vmem>>, vector<1x1x8x32xf32>
    %153 = vector.shape_cast %152 : vector<1x1x8x32xf32> to vector<8x32xf32>
    %154 = vector.shape_cast %150 : vector<8x32xf32> to vector<1x1x8x32xf32>
    tpu.vector_store %arg7[%c0_50, %151, %c0_51, %c0_52], %154 {strides = array<i32>} : memref<1x4x8x32xf32, #tpu.memory_space<vmem>>, vector<1x1x8x32xf32>,
    %c3_i32_53 = arith.constant 3 : i32
    %c1_i32_54 = arith.constant 1 : i32
    %155 = arith.subi %c1_i32_54, %arg0 : i32
    %156 = arith.muli %155, %c3_i32_53 : i32
    %c3_i32_55 = arith.constant 3 : i32
    %157 = arith.subi %c3_i32_55, %c3_i32_53 : i32
    %158 = arith.muli %arg0, %157 : i32
    %159 = arith.addi %156, %158 : i32
    %160 = arith.addi %22, %159 : i32
    %161 = arith.index_cast %159 : i32 to index
    %c0_56 = arith.constant 0 : index
    %c0_57 = arith.constant 0 : index
    %162 = vector.load %arg8[%161, %c0_56, %c0_57] : memref<4x8x128xf32, #tpu.memory_space<vmem>>, vector<1x8x128xf32>
    %163 = vector.shape_cast %162 : vector<1x8x128xf32> to vector<8x128xf32>
    %cst_58 = arith.constant dense<0.000000e+00> : vector<8x128xf32>
    %164 = tpu.matmul %143, %16, %cst_58 {dimension_numbers = #tpu.dot_dimension_numbers<[1], [0], [0], [1], [0, 0, 1, 1], [], []>} : vector<8x32xf32>, vector<32x128xf32>, vector<8x128xf32> -> vector<8x128xf32>
    %165 = arith.addf %163, %164 : vector<8x128xf32>
    %166 = arith.negf %165 : vector<8x128xf32>
    %167 = math.exp %166 : vector<8x128xf32>
    %cst_59 = arith.constant 1.000000e+00 : f32
    %168 = vector.broadcast %cst_59 : f32 to vector<8x128xf32>
    %169 = arith.addf %168, %167 : vector<8x128xf32>
    %170 = arith.divf %168, %169 : vector<8x128xf32>
    %171 = vector.extract_strided_slice %170 {offsets = [0, 0], sizes = [8, 32], strides = [1, 1]} : vector<8x128xf32> to vector<8x32xf32>
    %172 = vector.extract_strided_slice %170 {offsets = [0, 32], sizes = [8, 32], strides = [1, 1]} : vector<8x128xf32> to vector<8x32xf32>
    %173 = vector.extract_strided_slice %170 {offsets = [0, 96], sizes = [8, 32], strides = [1, 1]} : vector<8x128xf32> to vector<8x32xf32>
    %174 = vector.extract_strided_slice %165 {offsets = [0, 64], sizes = [8, 32], strides = [1, 1]} : vector<8x128xf32> to vector<8x32xf32>
    %175 = math.tanh %174 : vector<8x32xf32>
    %176 = arith.mulf %172, %146 : vector<8x32xf32>
    %177 = arith.mulf %171, %175 : vector<8x32xf32>
    %178 = arith.addf %176, %177 : vector<8x32xf32>
    %179 = math.tanh %178 : vector<8x32xf32>
    %180 = arith.mulf %173, %179 : vector<8x32xf32>
    %181 = vector.broadcast %160 : i32 to vector<8x1xi32>
    %182 = arith.cmpi sgt, %14, %181 : vector<8x1xi32>
    %183 = vector.shape_cast %182 : vector<8x1xi1> to vector<8x1xi1>
    %184 = vector.broadcast %183 : vector<8x1xi1> to vector<8x32xi1>
    %185 = arith.select %184, %180, %143 : vector<8x32xi1>, vector<8x32xf32>
    %186 = vector.shape_cast %182 : vector<8x1xi1> to vector<8x1xi1>
    %187 = vector.broadcast %186 : vector<8x1xi1> to vector<8x32xi1>
    %188 = arith.select %187, %178, %146 : vector<8x32xi1>, vector<8x32xf32>
    %cst_60 = arith.constant 0.000000e+00 : f32
    %189 = vector.shape_cast %182 : vector<8x1xi1> to vector<8x1xi1>
    %190 = vector.broadcast %189 : vector<8x1xi1> to vector<8x32xi1>
    %191 = vector.broadcast %cst_60 : f32 to vector<8x32xf32>
    %192 = arith.select %190, %180, %191 : vector<8x32xi1>, vector<8x32xf32>
    %c0_61 = arith.constant 0 : index
    %193 = arith.index_cast %159 : i32 to index
    %c0_62 = arith.constant 0 : index
    %c0_63 = arith.constant 0 : index
    %194 = vector.load %arg7[%c0_61, %193, %c0_62, %c0_63] : memref<1x4x8x32xf32, #tpu.memory_space<vmem>>, vector<1x1x8x32xf32>
    %195 = vector.shape_cast %194 : vector<1x1x8x32xf32> to vector<8x32xf32>
    %196 = vector.shape_cast %192 : vector<8x32xf32> to vector<1x1x8x32xf32>
    tpu.vector_store %arg7[%c0_61, %193, %c0_62, %c0_63], %196 {strides = array<i32>} : memref<1x4x8x32xf32, #tpu.memory_space<vmem>>, vector<1x1x8x32xf32>,
    %c4_i32_64 = arith.constant 4 : i32
    %197 = arith.index_cast %arg0 : i32 to index
    %c0_65 = arith.constant 0 : index
    %c0_66 = arith.constant 0 : index
    %198 = vector.load %arg9[%197, %c0_65, %c0_66] : memref<2x8x32xf32, #tpu.memory_space<vmem>>, vector<1x8x32xf32>
    %199 = vector.shape_cast %198 : vector<1x8x32xf32> to vector<8x32xf32>
    %200 = vector.shape_cast %185 : vector<8x32xf32> to vector<1x8x32xf32>
    tpu.vector_store %arg9[%197, %c0_65, %c0_66], %200 {strides = array<i32>} : memref<2x8x32xf32, #tpu.memory_space<vmem>>, vector<1x8x32xf32>,
    %201 = arith.index_cast %arg0 : i32 to index
    %c0_67 = arith.constant 0 : index
    %c0_68 = arith.constant 0 : index
    %202 = vector.load %arg10[%201, %c0_67, %c0_68] : memref<2x8x32xf32, #tpu.memory_space<vmem>>, vector<1x8x32xf32>
    %203 = vector.shape_cast %202 : vector<1x8x32xf32> to vector<8x32xf32>
    %204 = vector.shape_cast %188 : vector<8x32xf32> to vector<1x8x32xf32>
    tpu.vector_store %arg10[%201, %c0_67, %c0_68], %204 {strides = array<i32>} : memref<2x8x32xf32, #tpu.memory_space<vmem>>, vector<1x8x32xf32>,
    return
  }
  func.func @transform_0(%arg0: i32, %arg1: i32) -> (i32, i32) {
    %c0_i32 = arith.constant 0 : i32
    %c0_i32_0 = arith.constant 0 : i32
    %c0_i32_1 = arith.constant 0 : i32
    return %c0_i32, %c0_i32_0 : i32, i32
  }
  func.func @transform_1(%arg0: i32, %arg1: i32) -> (i32, i32, i32) {
    %c1_i32 = arith.constant 1 : i32
    %0 = arith.subi %c1_i32, %arg0 : i32
    %1 = arith.muli %0, %arg1 : i32
    %c1_i32_0 = arith.constant 1 : i32
    %2 = arith.subi %c1_i32_0, %arg1 : i32
    %3 = arith.muli %arg0, %2 : i32
    %4 = arith.addi %1, %3 : i32
    %c0_i32 = arith.constant 0 : i32
    %c0_i32_1 = arith.constant 0 : i32
    %c0_i32_2 = arith.constant 0 : i32
    return %4, %c0_i32, %c0_i32_1 : i32, i32, i32
  }
  func.func @transform_2(%arg0: i32, %arg1: i32) -> (i32, i32, i32) {
    %c0_i32 = arith.constant 0 : i32
    %c0_i32_0 = arith.constant 0 : i32
    %c0_i32_1 = arith.constant 0 : i32
    return %arg0, %c0_i32, %c0_i32_0 : i32, i32, i32
  }
  func.func @transform_3(%arg0: i32, %arg1: i32) -> (i32, i32, i32) {
    %c0_i32 = arith.constant 0 : i32
    %c0_i32_0 = arith.constant 0 : i32
    %c0_i32_1 = arith.constant 0 : i32
    return %arg0, %c0_i32, %c0_i32_0 : i32, i32, i32
  }
  func.func @transform_4(%arg0: i32, %arg1: i32) -> (i32, i32, i32) {
    %c0_i32 = arith.constant 0 : i32
    %c0_i32_0 = arith.constant 0 : i32
    %c0_i32_1 = arith.constant 0 : i32
    return %arg0, %c0_i32, %c0_i32_0 : i32, i32, i32
  }
  func.func @transform_5(%arg0: i32, %arg1: i32) -> (i32, i32, i32, i32) {
    %c1_i32 = arith.constant 1 : i32
    %0 = arith.subi %c1_i32, %arg0 : i32
    %1 = arith.muli %0, %arg1 : i32
    %c1_i32_0 = arith.constant 1 : i32
    %2 = arith.subi %c1_i32_0, %arg1 : i32
    %3 = arith.muli %arg0, %2 : i32
    %4 = arith.addi %1, %3 : i32
    %c0_i32 = arith.constant 0 : i32
    %c0_i32_1 = arith.constant 0 : i32
    %c0_i32_2 = arith.constant 0 : i32
    return %arg0, %4, %c0_i32, %c0_i32_1 : i32, i32, i32, i32
  }
}

</mosaic_0001>

<bundles_post_ra>
// kernel: tpu_custom_call.1
= control target key start
LH: loop header
LB: loop body
LE: loop exit
PB: predicated region body
PF: predicated region fallthrough
CT: control target
= control target key end

     0   :  { %s2376_s0 = inlined_call_operand.vmem [shape: s32[8,1], index: 0, kind: input, shape index: {}]   ;;  %s2377_s1 = inlined_call_operand.hbm [shape: f32[8,8,16], index: 1, kind: input, shape index: {}]   ;;  %s2378_s2 = inlined_call_operand.hbm [shape: f32[2,16,128], index: 2, kind: input, shape index: {}]   ;;  %s2379_s3 = inlined_call_operand.vmem [shape: f32[2,1,128], index: 3, kind: input, shape index: {}]   ;;  %s2380_s4 = inlined_call_operand.hbm [shape: f32[2,32,128], index: 4, kind: input, shape index: {}]   ;;  %s2381_s5 = inlined_call_operand.hbm [shape: f32[2,8,8,32], index: 5, kind: output, shape index: {}]  }
   0x1   :  { %2404 = sst [smem:[#allocation25_spill]] %s2376_s0 }
   0x2   :  { %2405 = sst [smem:[#allocation26_spill]] %s2378_s2 }
   0x3   :  { %2406 = sst [smem:[#allocation27_spill]] %s2379_s3 }
   0x4   :  { %2407 = sst [smem:[#allocation28_spill]] %s2381_s5 }
   0x5   :  { %10 = vsyncpa [#allocation6], 0 }
   0x6   :  { %12 = vsyncpa [#allocation6 + $0x1], 0 }
   0x7   :  { %13 = vsyncpa [#allocation9], 0 }
   0x8   :  { %15 = vsyncpa [#allocation9 + $0x1], 0 }
   0x9   :  { %16 = vsyncpa [#allocation7], 0 }
   0xa   :  { %18 = vsyncpa [#allocation7 + $0x1], 0  ;;  %s1812_s18 = smov 0   ;;  %s1814_s19 = smov 0  }
   0xb   :  { %s1816_s20 = smov 0   ;;  %s1818_s21 = smov 0  }
   0xc   :  { %s1820_s22 = smov 0   ;;  %s1822_s23 = smov 0  }
   0xd   :  { %s1824_s24 = smov 0   ;;  %s1826_s25 = smov 0  }
   0xe   :  { %s1828_s26 = smov 0   ;;  %s1830_s27 = smov 0  }
   0xf   :  { %s1832_s28 = smov 0   ;;  %s1834_s29 = smov 0  }
  0x10   :  { %s1836_s30 = smov 0   ;;  %s1838_s6 = smov 0  }
  0x11 LB: > { %2408 = sst [smem:[#allocation15_spill]] %s1729_s22  ;;  %s1881_s7 = sadd.s32 4294967295, %s1765_s6   ;;  %s1765_s6 = sphi %s1838_s6, %s24_s6   ;;  %s1761_s30 = sphi %s1836_s30, %s2467_s30   ;;  %s1757_s29 = sphi %s1834_s29, %s2456_s29   ;;  %s1753_s28 = sphi %s1832_s28, %s2466_s28   ;;  %s1749_s27 = sphi %s1830_s27, %s2455_s27   ;;  %s1745_s26 = sphi %s1828_s26, %s2454_s26   ;;  %s1741_s25 = sphi %s1826_s25, %s2465_s25   ;;  %s1737_s24 = sphi %s1824_s24, %s2464_s24   ;;  %s1733_s23 = sphi %s1822_s23, %s2463_s23   ;;  %s1729_s22 = sphi %s1820_s22, %s2462_s22   ;;  %s1725_s21 = sphi %s1818_s21, %s2451_s21   ;;  %s1721_s20 = sphi %s1816_s20, %s2461_s20   ;;  %s1717_s19 = sphi %s1814_s19, %s2460_s19   ;;  %s1713_s18 = sphi %s1812_s18, %s2459_s18  }
  0x12   : > { %2409 = sst [smem:[#allocation16_spill]] %s1745_s26  ;;  %p82_p0 = scmp.eq.s32.totalorder %s1765_s6, 0 }
  0x13   : > { %2410 = sst [smem:[#allocation17_spill]] %s1749_s27  ;;  %p88_p1 = scmp.eq.s32.totalorder %s1881_s7, 0 }
  0x14   : > { %2411 = sst [smem:[#allocation18_spill]] %s1753_s28  ;;  %p107_p2 = scmp.ne.s32.totalorder %s1733_s23, %s1729_s22 }
  0x15   : > { %2412 = sst [smem:[#allocation19_spill]] %s1757_s29  ;;  %p113_p3 = scmp.ne.s32.totalorder %s1729_s22, %s1725_s21 }
  0x16   : > { %p2396_p4 = scmp.lt.s32.totalorder %s1765_s6, 4  ;;  %p109_p5 = por %p107_p2, %p82_p0 }
  0x17   : > { %p1894_p6 = por %p113_p3, %p88_p1  ;;  %s256_s10 = sand.u32 1, %s1765_s6  }
  0x18   : > { %s258_s11 = sand.u32 1, %s1733_s23   ;;  %s1270_s13 = sshll.u32 %s1761_s30, 8 }
  0x19   : > { %s2413_s9 = scalar_select %p1894_p6, 1, 0 }
  0x1a   : > { %s1229_s12 = sshll.u32 %s258_s11, 4  ;;  %s2415_s2 = sld [smem:[#allocation26_spill]] }
  0x1b   : > { %2414 = sst [smem:[#allocation20_spill]] %s2413_s9  ;;  %s260_s17 = scalar_lea.vmem [#allocation8], %s1229_s12 }
  0x1c   : > { %s267_s8 = sshll.u32 %s260_s17, 4  ;;  %p1906_p7 = pnand %p2396_p4, %p109_p5  ;;  %s268_s8 = int_to_ptr.vmem [resolvable:$true] %s267_s8 }
  0x1d   : > { %s1232_s5 = sshll.u32 %s258_s11, 5  ;;  %p1235_p8 = scmp.ge.s32.totalorder %s1765_s6, 1 }
  0x1e   : > { %s1911_s0 = scalar_lea.sflag [#allocation9], %s256_s10  ;;  %p2395_p9 = pneg %p1906_p7 }
  0x1f   : > { %s1546_s27 = scalar_lea.vmem %s268_s8, 256  ;;  %s1767_s12 = smov [#allocation8]  }
  0x20   : > { %s266_s16 = scalar_lea.hbm %s2415_s2, %s1270_s13  ;;  %p1547_p10 = scmp.ne.s32.totalorder %s268_s8, %s1546_s27 }
  0x21   : > { %s1551_s13 = sshll.u32 %s1767_s12, 4  ;;  %s1552_s13 = int_to_ptr.vmem [resolvable:$false] %s1551_s13 }
  0x22   : > { %p1549_p11 = pnand %p1547_p10, %p2395_p9  ;;  %s1553_s14 = scalar_lea.vmem %s1552_s13, 512 }
  0x23   : > { %p1554_p13 = scmp.lt.s32.totalorder %s268_s8, %s1552_s13  ;;  %p1555_p2 = scmp.lt.s32.totalorder %s1553_s14, %s1546_s27 }
  0x24   : > { %p1550_p12 = pneg %p1549_p11 }
  0x25   : > { %p1556_p3 = por %p1555_p2, %p1554_p13 }
  0x27   : > { %p1557_p5 = pnand %p1556_p3, %p1550_p12 }
  0x29   : > { %1560 = shalt.err (!%p1557_p5)
}
  0x2a   : > { %s2384_s11 = smov 128   ;;  %s2386_s10 = smov 8  }
  0x2b   : > { %1366 = dma.hbm_to_vmem [thread:$0]  (!%p1906_p7), %s266_s16, 256, %s268_s8, %s1911_s0, %s2384_s11, %s2384_s11, %s2386_s10  }
  0x2c   : > { %s287_s27 = scalar_lea.vmem [#allocation10], %s1232_s5  ;;  %p302_p10 = scmp.lt.s32.totalorder %s1765_s6, 5 }
  0x2d   : > { %s1924_s15 = sshll.u32 %s287_s27, 4  ;;  %s33_s13 = sadd.s32 1, %s1757_s29  ;;  %s295_s15 = int_to_ptr.vmem [resolvable:$true] %s1924_s15 }
  0x2e   : > { %p1929_p11 = pnand %p1235_p8, %p302_p10  ;;  %s36_s14 = sadd.s32 1, %s1761_s30 }
  0x2f   : > { %p34_p12 = scmp.ge.s32.totalorder %s33_s13, 2  ;;  %s61_s8 = ssub.s32 1, %s1761_s30 }
  0x30   : > { %s62_s5 = smul.u32 %s1757_s29, %s61_s8  ;;  %s63_s16 = ssub.s32 1, %s1757_s29 }
  0x31   : > { %s2469_s13 = smov (%p34_p12, %s33_s13), 0  ;;  %s2471_s14 = smov (!%p34_p12, %s36_s14), %s1761_s30 }
  0x32   : > { %2418 = sst [smem:[#allocation21_spill]] %s2469_s13  ;;  %s64_s27 = smul.u32 %s1761_s30, %s63_s16 }
  0x33   : > { %s68_s11 = ssub.s32 1, %s2469_s13  ;;  %p38_p8 = scmp.ge.s32.totalorder %s2471_s14, 2 }
  0x34   : > { %s74_s10 = sadd.s32 1, %s1745_s26  ;;  %s1945_s12 = sadd.s32 %s64_s27, %s62_s5 }
  0x35   : > { %p81_p13 = scmp.ne.s32.totalorder %s1745_s26, %s1741_s25  ;;  %s2473_s14 = smov (%p38_p8, %s2471_s14), 0 }
  0x36   : > { %2419 = sst [smem:[#allocation22_spill]] %s2473_s14  ;;  %p87_p3 = scmp.ne.s32.totalorder %s1741_s25, %s1737_s24 }
  0x37   : > { %p1953_p2 = por %p82_p0, %p81_p13  ;;  %s66_s16 = ssub.s32 1, %s2473_s14 }
  0x38   : > { %s69_s5 = smul.u32 %s68_s11, %s2473_s14  ;;  %p1964_p5 = por %p88_p1, %p87_p3 }
  0x39   : > { %s67_s27 = smul.u32 %s66_s16, %s2469_s13  ;;  %s97_s29 = ssub.s32 %s1761_s30, %s2473_s14 }
  0x3a   : > { %s2421_s2 = scalar_select %p1964_p5, 1, 0 }
  0x3b   : > { %s190_s3 = sadd.s32 1, %s1721_s20  ;;  %s70_s28 = sadd.s32 %s69_s5, %s67_s27 }
  0x3c   : > { %p98_p0 = scmp.eq.s32.totalorder %s97_s29, 0  ;;  %s71_s24 = ssub.s32 %s1945_s12, %s70_s28 }
  0x3d   : > { %p200_p10 = scmp.ne.s32.totalorder %s1721_s20, %s1717_s19  ;;  %p72_p12 = scmp.eq.s32.totalorder %s71_s24, 0 }
  0x3e   : > { %s187_s9 = sor.u32 %s97_s29, %s71_s24  ;;  %s2422_s22 = sadd.s32 1, %s1733_s23 }
  0x3f   : > { %s1977_s11 = scalar_select %p98_p0, %s1733_s23, %s2422_s22  }
  0x40   : > { %s1980_s16 = scalar_select %p72_p12, %s1745_s26, %s74_s10  }
  0x41   : > { %2423 = sst [smem:[#allocation23_spill]] %s1977_s11  ;;  %p188_p1 = scmp.eq.s32.totalorder %s187_s9, 0 }
  0x42   : > { %2424 = sst [smem:[#allocation24_spill]] %s1980_s16  ;;  %p201_p8 = scmp.eq.s32.totalorder %s1881_s7, 3 }
  0x43   : > { %p206_p13 = scmp.ne.s32.totalorder %s1717_s19, %s1713_s18  ;;  %s2425_s14 = sadd.s32 4294967294, %s1765_s6  }
  0x44   : > { %p207_p3 = scmp.eq.s32.totalorder %s2425_s14, 3  ;;  %p1990_p9 = por %p201_p8, %p200_p10 }
  0x45   : > { %s1988_s5 = scalar_select %p188_p1, %s1721_s20, %s190_s3  }
  0x46   : > { %s2426_s28 = scalar_select %p1990_p9, 1, 0 }
  0x47   : > { %p1994_p4 = por %p207_p3, %p206_p13  ;;  %s230_s22 = sand.u32 1, %s1745_s26  }
  0x48   : > { %s1269_s27 = sshll.u32 %s1945_s12, 9  ;;  %s1226_s10 = sshll.u32 %s230_s22, 5 }
  0x49   : > { %s2427_s29 = scalar_select %p1994_p4, 1, 0 }
  0x4a   : > { %s2003_s9 = scalar_lea.hbm %s2377_s1, %s1269_s27  ;;  %s234_s3 = scalar_lea.vmem [#allocation5], %s1226_s10 }
  0x4b   : > { %s246_s14 = sshll.u32 %s234_s3, 4  ;;  %p2428_p0 = scmp.lt.s32.totalorder %s1765_s6, 4  ;;  %s2013_s14 = int_to_ptr.vmem [resolvable:$true] %s246_s14 }
  0x4c   : > { %s1271_s12 = sshll.u32 %s1761_s30, 9  ;;  %s231_s27 = scalar_lea.sflag [#allocation6], %s230_s22 }
  0x4d   : > { %p2009_p10 = pnand %p2428_p0, %p1953_p2  ;;  %s2019_s13 = scalar_lea.hbm %s2380_s4, %s1271_s12 }
  0x4e   : > { %s1561_s24 = scalar_lea.hbm %s2003_s9, 512  ;;  %s1566_s3 = scalar_lea.hbm %s2377_s1, 1024 }
  0x4f   : > { %p1562_p12 = scmp.ne.s32.totalorder %s2003_s9, %s1561_s24  ;;  %p1563_p1 = pneg %p2009_p10 }
  0x50   : > { %p1568_p2 = scmp.lt.s32.totalorder %s1566_s3, %s1561_s24 }
  0x51   : > { %p1564_p8 = pnand %p1563_p1, %p1562_p12 }
  0x53   : > { %p1565_p13 = pneg %p1564_p8 }
  0x55   : > { %p1570_p3 = pnand %p1568_p2, %p1565_p13 }
  0x57   : > { %1573 = shalt.err (!%p1570_p3)
}
  0x58   : > { %s1574_s26 = scalar_lea.vmem %s2013_s14, 512  ;;  %s1770_s11 = smov [#allocation5]  }
  0x59   : > { %p1575_p0 = scmp.ne.s32.totalorder %s2013_s14, %s1574_s26  ;;  %s1579_s22 = sshll.u32 %s1770_s11, 4  ;;  %s1580_s22 = int_to_ptr.vmem [resolvable:$false] %s1579_s22 }
  0x5a   : > { %s1581_s12 = scalar_lea.vmem %s1580_s22, 1024  ;;  %p1582_p12 = scmp.lt.s32.totalorder %s2013_s14, %s1580_s22 }
  0x5b   : > { %p1577_p4 = pnand %p1575_p0, %p1563_p1  ;;  %p1583_p8 = scmp.lt.s32.totalorder %s1581_s12, %s1574_s26 }
  0x5d   : > { %p1578_p9 = pneg %p1577_p4  ;;  %p1584_p6 = por %p1583_p8, %p1582_p12 }
  0x5f   : > { %p1585_p5 = pnand %p1584_p6, %p1578_p9 }
  0x61   : > { %1588 = shalt.err (!%p1585_p5)
}
  0x62   : > { %s2430_s24 = smov 8   ;;  %s2431_s8 = smov 128  }
  0x63   : > { %1363 = dma.hbm_to_vmem [thread:$0]  (!%p2009_p10), %s2003_s9, 512, %s2013_s14, %s231_s27, %s2431_s8, %s2431_s8, %s2430_s24  }
  0x64   : > { %s1602_s10 = scalar_lea.vmem %s295_s15, 512  ;;  %p2432_p1 = pneg %p1906_p7 }
  0x65   : > { %p1603_p4 = scmp.ne.s32.totalorder %s295_s15, %s1602_s10  ;;  %s1771_s3 = smov [#allocation10]  }
  0x66   : > { %s1607_s26 = sshll.u32 %s1771_s3, 4  ;;  %s1608_s26 = int_to_ptr.vmem [resolvable:$false] %s1607_s26 }
  0x67   : > { %p1605_p13 = pnand %p1603_p4, %p2432_p1  ;;  %s1609_s11 = scalar_lea.vmem %s1608_s26, 1024 }
  0x68   : > { %p1610_p6 = scmp.lt.s32.totalorder %s295_s15, %s1608_s26  ;;  %p1611_p9 = scmp.lt.s32.totalorder %s1609_s11, %s1602_s10 }
  0x69   : > { %p1606_p2 = pneg %p1605_p13 }
  0x6a   : > { %p1612_p5 = por %p1611_p9, %p1610_p6 }
  0x6c   : > { %p1613_p3 = pnand %p1612_p5, %p1606_p2 }
  0x6e   : > { %1616 = shalt.err (!%p1613_p3)
}
  0x6f   : > { %1369 = dma.hbm_to_vmem [thread:$0]  (!%p1906_p7), %s2019_s13, 512, %s295_s15, %s1911_s0, %s2431_s8, %s2431_s8, %s2430_s24  }
  0x70   : > { %306 = sbr.rel (%p1929_p11) target bundleno = 2944 (0xb80), region = 40  ;;  %s308_s16 = sand.u32 (!%p1929_p11), 1, %s1741_s25  }
  0x71   : > { %s1236_s9 = sshll.u32 (!%p1929_p11), %s308_s16, 5  ;;  %s309_s14 = scalar_lea.sflag (!%p1929_p11), [#allocation6], %s308_s16 }
  0x72   : > { %s2052_s27 = scalar_lea.vmem (!%p1929_p11), [#allocation5], %s1236_s9  ;;  %p2433_p10 = scmp.ne.s32.totalorder (!%p1929_p11), %s2421_s2, 0 }
  0x75   : > { %1700 = dma.done.wait (%p2433_p10), %s309_s14, 512  }
  0x76   : > { %1702 = vsyncadd (%p2433_p10), %s309_s14, 4294966784  ;;  %s2434_s21 = sld [smem:[#allocation15_spill]]  ;;  %s317_s12 = sand.u32 1, %s1881_s7  }
  0x77   : > { %s2435_s22 = sld [smem:[#allocation20_spill]]  ;;  %s318_s17 = scalar_lea.sflag [#allocation9], %s317_s12 }
  0x7c   : > { %s319_s0 = sand.u32 1, %s2434_s21  }
  0x7d   : > { %s1237_s15 = sshll.u32 %s319_s0, 4  ;;  %p2436_p7 = scmp.ne.s32.totalorder %s2435_s22, 0 }
  0x7e   : > { %s321_s13 = scalar_lea.vmem [#allocation8], %s1237_s15 }
  0x7f   : > { %1704 = dma.done.wait (%p2436_p7), %s318_s17, 768  }
  0x80   : > { %1706 = vsyncadd (%p2436_p7), %s318_s17, 4294966528  ;;  %s2437_s24 = sld [smem:[#allocation18_spill]]  ;;  %s1238_s8 = sshll.u32 %s319_s0, 5 }
  0x81   : > { %s2403_s2 = sand.u32 1, %s1717_s19   ;;  %s2438_s26 = sld [smem:[#allocation27_spill]] }
  0x82   : > { %s1239_s10 = sshll.u32 %s2403_s2, 5  ;;  %s2075_s16 = scalar_lea.vmem [#allocation10], %s1238_s8 }
  0x83   : > { %s2077_s9 = scalar_lea.vmem [#allocation11], %s1239_s10  ;;  %s2439_s14 = sld [smem:[#allocation17_spill]] }
  0x86   : > { %p376_p11 = scmp.lt.s32.totalorder %s2437_s24, 1 }
  0x88   : > { %s2475_s24 = smov (!%p376_p11, %s2437_s24), 1 }
  0x89   : > { %s378_s11 = scalar_lea.vmem %s2438_s26, %s2475_s24  ;;  %p1240_p0 = scmp.ne.s32.totalorder %s2439_s14, 0 }
  0x8a   : > { %s2440_s21 = sld [smem:[#allocation18_spill]] (!%p1240_p0) }
  0x8b   : > { %388 = sbr.rel (%p1240_p0) target bundleno = 147 (0x93), region = 56 }
  0x90   : > { %s1241_s22 = sshll.u32 %s2440_s21, 3  ;;  %vm391_vm0 = vcmask 261120   ;;  %v1772_v0 = vmov 0.0  }
  0x91   : > { %s390_s12 = scalar_lea.vmem [#allocation3], %s1241_s22  ;;  %s393_s0 = scalar_lea.vmem [#allocation4], %s1241_s22 }
  0x92   : > { %392 = vst.msk [vmem:[%s390_s12] sm:$0xff] %vm391_vm0, %v1772_v0  ;;  %394 = vst.msk [vmem:[%s393_s0] sm:$0xff] %vm391_vm0, %v1772_v0 }
  0x93 PF: > { %v400_v1 = vld [vmem:[%s321_s13 + $0x8] sm:$0xff]  ;;  %s2441_s15 = sld [smem:[#allocation18_spill]]  ;;  %v399_v2 = vld [vmem:[%s321_s13] sm:$0xff]  ;;  %vm408_vm1 = vcmask 130048   ;;  %v1773_v5 = vmov 0.0   ;;  %vm1774_vm2 = vmmov 0  }
  0x94   : > { %v395_v3 = vld [vmem:[%s2052_s27] sm:$0xff]  ;;  %1298 = vmatprep.subr.mxu0 %v400_v1  ;;  %v396_v4 = vld [vmem:[%s2052_s27 + $0x8] sm:$0xff]  ;;  %1308 = vmatprep.subr.mxu1 %v1773_v5  ;;  %v2086_v6 = vld [vmem:[%s2075_s16 + $0x18] sm:$0xff]  ;;  %vm531_vm3 = vcmask 261120   ;;  %s2443_s3 = sld [smem:[#allocation17_spill]]  ;;  %v1775_v26 = vmov 0  }
  0x95   : > { %1302 = vmatprep.mubr.msk.f32.mxu0 %vm408_vm1, %v395_v3  ;;  %1299 = vmatpush3.msra.mxu0 %v400_v1  ;;  %v2089_v7 = vld [vmem:[%s2075_s16 + $0x10] sm:$0xff]  ;;  %v2098_v9 = vld [vmem:[%s2075_s16 + $0x8] sm:$0xff]  ;;  %v398_v10 = vld [vmem:[%s2052_s27 + $0x18] sm:$0xff]  ;;  %s1776_s26 = smov 64   ;;  %s2444_s2 = sld [smem:[#allocation25_spill]] }
  0x96   : > { %1300 = vmatprep.subr.mxu0 %v399_v2  ;;  %v397_v8 = vld [vmem:[%s2052_s27 + $0x10] sm:$0xff]  ;;  %1309 = vmatpush3.msra.mxu1 %v2086_v6  ;;  %v2106_v11 = vld [vmem:[%s2075_s16] sm:$0xff]  ;;  %s1777_s16 = smov 32   ;;  %p2447_p8 = scmp.ne.s32.totalorder %s2426_s28, 0 }
  0x97   : > { %1301 = vmatpush3.msra.mxu0 %v399_v2  ;;  %1310 = vmatprep.subr.mxu1 %v1773_v5  ;;  %v1242_v13 = vld [vmem:[%s378_s11] ss:$0 sm:$0xff] }
  0x98   : > { %1303 = vmatmul.mubr.msk.f32.vlgmr.msra.gmra.mxu0 %vm408_vm1, %v396_v4  ;;  %1311 = vmatpush3.msra.mxu1 %v2089_v7 }
  0x99   : > { %s2092_s17 = sshll.u32 %s2441_s15, 3  ;;  %1305 = vmatprep.mubr.msk.f32.mxu0 %vm408_vm1, %v397_v8  ;;  %1312 = vmatprep.subr.mxu1 %v1773_v5  ;;  %s1249_s24 = smul.u32 24, %s2441_s15 }
  0x9a   : > { %1313 = vmatpush3.msra.mxu1 %v2098_v9  ;;  %1316 = vmatprep.mubr.msk.f32.mxu1 %vm1774_vm2, %v1773_v5  ;;  %s522_s13 = scalar_lea.vmem [#allocation3], %s2092_s17  ;;  %s2402_s11 = scalar_lea.vmem [#allocation4], %s2092_s17 }
  0x9b   : > { %v2114_v12 = vld [vmem:[%s522_s13] sm:$0xff]  ;;  %1314 = vmatprep.subr.mxu1 %v1773_v5  ;;  %1319 = vmatprep.subr.mxu0 %v1773_v5  ;;  %s529_s7 = scalar_lea.vmem [#allocation2], %s1249_s24  ;;  %s517_s14 = ssub.s32 1, %s2443_s3 }
  0x9c   : > { %1306 = vmatmul.mubr.msk.f32.gmra.mxu0 %vm408_vm1, %v398_v10  ;;  %1315 = vmatpush3.msra.mxu1 %v2106_v11  ;;  %v525_v28 = vld [vmem:[%s2402_s11] sm:$0xff]  ;;  %s2159_s21 = ssub.s32 1, %s2441_s15  ;;  %s518_s12 = smul.u32 %s2441_s15, %s517_s14 }
  0x9d   : > { %1317 = vmatmul.mubr.msk.f32.vlgmr.msra.gmra.mxu1 %vm531_vm3, %v2114_v12  ;;  %1320 = vmatpush3.msra.mxu0 %v2086_v6  ;;  %s516_s22 = smul.u32 %s2443_s3, %s2159_s21  ;;  %v2171_v32 = vld [vmem:[%s2444_s2] sm:$0xff]  ;;  %s1778_s3 = smov 96  }
  0x9e   : > { %1321 = vmatprep.subr.mxu0 %v1773_v5  ;;  %1327 = vmatprep.mubr.msk.f32.mxu0 %vm1774_vm2, %v1773_v5  ;;  %s526_s27 = smul.u32 3, %s2441_s15  ;;  %s1252_s2 = sshll.u32 %s2441_s15, 1 }
  0x9f   : > { %1322 = vmatpush3.msra.mxu0 %v2089_v7  ;;  %1330 = vmatprep.subr.mxu1 %v1773_v5  ;;  %s519_s0 = sadd.s32 %s518_s12, %s516_s22  ;;  %s2200_s11 = sadd.s32 %s1252_s2, %s2159_s21 }
  0xa0   : > { %1323 = vmatprep.subr.mxu0 %v1773_v5  ;;  %1331 = vmatpush3.msra.mxu1 %v2086_v6  ;;  %s2165_s8 = sshll.u32 %s519_s0, 2  ;;  %s1253_s14 = sshll.u32 %s2200_s11, 3 }
  0xa1   : > { %1324 = vmatpush3.msra.mxu0 %v2098_v9  ;;  %1332 = vmatprep.subr.mxu1 %v1773_v5  ;;  %s527_s10 = sadd.s32 %s2165_s8, %s526_s27  ;;  %s657_s22 = scalar_lea.vmem [#allocation2], %s1253_s14 }
  0xa2   : > { %1325 = vmatprep.subr.mxu0 %v1773_v5  ;;  %1333 = vmatpush3.msra.mxu1 %v2089_v7  ;;  %v634_v33 = vstv %s527_s10  ;;  %s655_s12 = sadd.s32 %s2165_s8, %s2200_s11  ;;  %s1256_s0 = sshll.u32 %s2159_s21, 1 }
  0xa3   : > { %1326 = vmatpush3.msra.mxu0 %v2106_v11  ;;  %1334 = vmatprep.subr.mxu1 %v1773_v5  ;;  %vm635_vm4 = vcmp.gt.s32.totalorder %v2171_v32, %v634_v33  ;;  %v759_v53 = vstv %s655_s12  ;;  %s2226_s27 = sadd.s32 %s2441_s15, %s1256_s0  ;;  %s897_s0 = smul.u32 3, %s2159_s21 }
  0xa4   : > { %1335 = vmatpush3.msra.mxu1 %v2098_v9  ;;  %1338 = vmatprep.mubr.msk.f32.mxu1 %vm1774_vm2, %v1773_v5  ;;  %v636_v37 = vsel %vm635_vm4, 1, %v1775_v26  ;;  %vm760_vm6 = vcmp.gt.s32.totalorder %v2171_v32, %v759_v53  ;;  %s1257_s10 = sshll.u32 %s2226_s27, 3  ;;  %s777_s2 = sadd.s32 %s2165_s8, %s2226_s27 }
  0xa5   : > { %1336 = vmatprep.subr.mxu1 %v1773_v5  ;;  %1341 = vmatprep.subr.mxu0 %v1773_v5  ;;  %v761_v55 = vsel %vm760_vm6, 1, %v1775_v26  ;;  %s773_s15 = scalar_lea.vmem %s2077_s9, %s1253_s14 [#allocation11]  ;;  %s1049_s14 = sshll.u32 %s2077_s9, 4  ;;  %s2290_s14 = int_to_ptr.vmem [resolvable:$true] %s1049_s14 }
  0xa6   : > { %1337 = vmatpush3.msra.mxu1 %v2106_v11  ;;  %1499 = vset.pattern.permute.xlu1 %v1775_v26 }
  0xa7   : > { %1500 = vset.pattern.permute.xlu0 %v1775_v26 }
 0x158   : > { %v1304_v14 = vpop.f32.mrf.mxu0 }
 0x159   : > { %v493_v15 = vadd.f32 %v1304_v14, %v1242_v13 }
 0x15a   : > { %v487_v16 = vpop.f32.mrf.mxu0 }
 0x15b   : > { %507 = vst [vmem:[#allocation2 + $0x8] sm:$0xff] %v493_v15  ;;  %v488_v17 = vadd.f32 %v1242_v13, %v487_v16 }
 0x15c   : > { %v1307_v18 = vpop.f32.mrf.mxu0 }
 0x15d   : > { %506 = vst [vmem:[#allocation2] sm:$0xff] %v488_v17  ;;  %v503_v19 = vadd.f32 %v1307_v18, %v1242_v13  ;;  %v601_v20 = vpop.f32.mrf.mxu1 }
 0x15e   : > { %v497_v21 = vpop.f32.mrf.mxu0 }
 0x15f   : > { %509 = vst [vmem:[#allocation2 + $0x18] sm:$0xff] %v503_v19  ;;  %v498_v22 = vadd.f32 %v1242_v13, %v497_v21  ;;  %v1318_v23 = vpop.f32.mrf.mxu1 }
 0x161   : > { %508 = vst [vmem:[#allocation2 + $0x10] sm:$0xff] %v498_v22 }
 0x168   : > { %v530_v24 = vld [vmem:[%s529_s7] sm:$0xff]  ;;  %s779_s7 = scalar_lea.vmem [#allocation2], %s1257_s10 }
 0x169   : > { %v605_v25 = vadd.f32 %v601_v20, %v530_v24  ;;  %v658_v49 = vld [vmem:[%s657_s22] sm:$0xff]  ;;  %s1260_s22 = smul.u32 24, %s2159_s21 }
 0x16a   : > { %v780_v8 = vld [vmem:[%s779_s7] sm:$0xff]  ;;  %s898_s7 = sadd.s32 %s2165_s8, %s897_s0 }
 0x16b   : > { %1501 = vtanh.f32 %v605_v25  ;;  %v1251_v29 = vmul.f32 -1.442695, %v605_v25  ;;  %s900_s12 = scalar_lea.vmem [#allocation2], %s1260_s22 }
 0x16c   : > { %v901_v33 = vld [vmem:[%s900_s12] sm:$0xff]  ;;  %s2445_s12 = sld [smem:[#allocation28_spill]] }
 0x16d   : > { %1503 = vpow2.f32 %v1251_v29 }
 0x178   : > { %v1502_v27 = vpop.eup %1501 }
 0x179   : > { %619 = vrot.lane.b32.xlu0 %v1502_v27, %s1776_s26 }
 0x17a   : > { %v1504_v30 = vpop.eup %1503 }
 0x17b   : > { %v609_v31 = vadd.f32 1.0, %v1504_v30 }
 0x17d   : > { %614 = vrot.lane.b32.xlu0 %v525_v28, %s1777_s16  ;;  %1505 = vrcp.f32 %v609_v31 }
 0x18a   : > { %v1506_v34 = vpop.eup %1505 }
 0x1eb   : > { %v620_v35 = vpop.permute.xlu0 %619 }
 0x1ec   : > { %v622_v36 = vmul.f32 %v1506_v34, %v620_v35 }
 0x1ee   : > { %624 = vrot.lane.b32.xlu1 %v622_v36, %s1777_s16 }
 0x1ef   : > { %v615_v38 = vpop.permute.xlu0 %614 }
 0x1f0   : > { %v617_v39 = vmul.f32 %v1506_v34, %v615_v38 }
 0x1f2   : > { %638 = vperm.xlu1 %1499, %v636_v37   ;;  %v1002_v37 = vstv %s898_s7  ;;  %s1617_s7 = scalar_lea.vmem %s2290_s14, 512 }
 0x1f3   : > { %vm1003_vm10 = vcmp.gt.s32.totalorder %v2171_v32, %v1002_v37  ;;  %p1618_p12 = scmp.ne.s32.totalorder %s2290_s14, %s1617_s7 }
 0x1f5   : > { %p1619_p4 = pnand %p1618_p12, %p2447_p8 }
 0x1f6   : > { %641 = vrot.lane.b32.xlu1 %v2114_v12, %s1778_s3  ;;  %v881_v12 = vstv %s777_s2  ;;  %s651_s2 = scalar_lea.vmem %s2077_s9, %s1249_s24 [#allocation11]  ;;  %s895_s24 = scalar_lea.vmem %s2077_s9, %s1257_s10 [#allocation11] }
 0x1f7   : > { %vm882_vm8 = vcmp.gt.s32.totalorder %v2171_v32, %v881_v12  ;;  %p1620_p1 = pneg %p1619_p4 }
 0x1f8   : > { %v883_v14 = vsel %vm882_vm8, 1, %v1775_v26 }
 0x260   : > { %v625_v40 = vpop.permute.xlu1 %624 }
 0x261   : > { %v627_v41 = vadd.f32 %v625_v40, %v617_v39  ;;  %v1004_v39 = vsel %vm1003_vm10, 1, %v1775_v26 }
 0x263   : > { %1507 = vtanh.f32 %v627_v41 }
 0x26d   : > { %v2179_v43 = vpop.permute.xlu1 %638 }
 0x26e   : > { %vm640_vm5 = vcmp.eq.s32.totalorder %v2179_v43, 1 }
 0x26f   : > { %v645_v62 = vsel %vm640_vm5, %v627_v41, %v615_v38 }
 0x270   : > { %v1508_v42 = vpop.eup %1507 }
 0x271   : > { %630 = vrot.lane.b32.xlu0 %v1508_v42, %s1776_s26  ;;  %v642_v45 = vpop.permute.xlu1 %641 }
 0x2e3   : > { %v631_v44 = vpop.permute.xlu0 %630 }
 0x2e4   : > { %v2181_v46 = vmul.f32 %v1506_v34, %v631_v44 }
 0x2e6   : > { %v644_v47 = vsel %vm640_vm5, %v2181_v46, %v642_v45  ;;  %v646_v40 = vsel %vm640_vm5, %v2181_v46, 0.0 }
 0x2e7   : > { %660 = vrot.lane.b32.xlu0 %v644_v47, %s1777_s16 }
 0x359   : > { %v661_v48 = vpop.permute.xlu0 %660 }
 0x35a   : > { %1328 = vmatmul.mubr.msk.f32.vlgmr.msra.gmra.mxu0 %vm531_vm3, %v661_v48 }
 0x35b   : > { %1342 = vmatpush3.msra.mxu0 %v2086_v6  ;;  %1349 = vmatprep.mubr.msk.f32.mxu0 %vm1774_vm2, %v1773_v5 }
 0x35c   : > { %1343 = vmatprep.subr.mxu0 %v1773_v5 }
 0x35d   : > { %1344 = vmatpush3.msra.mxu0 %v2089_v7 }
 0x35e   : > { %1345 = vmatprep.subr.mxu0 %v1773_v5 }
 0x35f   : > { %1346 = vmatpush3.msra.mxu0 %v2098_v9 }
 0x360   : > { %1347 = vmatprep.subr.mxu0 %v1773_v5 }
 0x361   : > { %1348 = vmatpush3.msra.mxu0 %v2106_v11 }
 0x41a   : > { %v730_v50 = vpop.f32.mrf.mxu0 }
 0x41b   : > { %v734_v51 = vadd.f32 %v730_v50, %v658_v49 }
 0x41c   : > { %v1329_v52 = vpop.f32.mrf.mxu0 }
 0x41d   : > { %1509 = vtanh.f32 %v734_v51  ;;  %v1255_v56 = vmul.f32 -1.442695, %v734_v51 }
 0x41f   : > { %1511 = vpow2.f32 %v1255_v56 }
 0x42a   : > { %v1510_v54 = vpop.eup %1509 }
 0x42b   : > { %744 = vrot.lane.b32.xlu1 %v1510_v54, %s1776_s26 }
 0x42c   : > { %v1512_v57 = vpop.eup %1511 }
 0x42d   : > { %v738_v58 = vadd.f32 1.0, %v1512_v57 }
 0x42f   : > { %763 = vperm.xlu1 %1499, %v761_v55   ;;  %1513 = vrcp.f32 %v738_v58 }
 0x43c   : > { %v1514_v59 = vpop.eup %1513 }
 0x43d   : > { %v742_v63 = vmul.f32 %v1514_v59, %v645_v62 }
 0x49d   : > { %v745_v60 = vpop.permute.xlu1 %744 }
 0x49e   : > { %v747_v61 = vmul.f32 %v1514_v59, %v745_v60 }
 0x4a0   : > { %749 = vrot.lane.b32.xlu0 %v747_v61, %s1777_s16 }
 0x4aa   : > { %v2214_v3 = vpop.permute.xlu1 %763 }
 0x4ab   : > { %vm765_vm7 = vcmp.eq.s32.totalorder %v2214_v3, 1 }
 0x512   : > { %v750_v0 = vpop.permute.xlu0 %749 }
 0x513   : > { %v752_v1 = vadd.f32 %v750_v0, %v742_v63 }
 0x515   : > { %1515 = vtanh.f32 %v752_v1  ;;  %v767_v21 = vsel %vm765_vm7, %v752_v1, %v645_v62 }
 0x522   : > { %v1516_v2 = vpop.eup %1515 }
 0x523   : > { %755 = vrot.lane.b32.xlu0 %v1516_v2, %s1776_s26 }
 0x595   : > { %v756_v4 = vpop.permute.xlu0 %755 }
 0x596   : > { %v2216_v5 = vmul.f32 %v1514_v59, %v756_v4 }
 0x598   : > { %v766_v6 = vsel %vm765_vm7, %v2216_v5, %v644_v47  ;;  %v768_v54 = vsel %vm765_vm7, %v2216_v5, 0.0 }
 0x599   : > { %782 = vrot.lane.b32.xlu1 %v766_v6, %s1777_s16 }
 0x60b   : > { %v783_v7 = vpop.permute.xlu1 %782 }
 0x60c   : > { %1339 = vmatmul.mubr.msk.f32.vlgmr.msra.gmra.mxu1 %vm531_vm3, %v783_v7 }
 0x6cc   : > { %v852_v9 = vpop.f32.mrf.mxu1 }
 0x6cd   : > { %v856_v10 = vadd.f32 %v852_v9, %v780_v8 }
 0x6ce   : > { %v1340_v11 = vpop.f32.mrf.mxu1 }
 0x6cf   : > { %1517 = vtanh.f32 %v856_v10  ;;  %v1259_v15 = vmul.f32 -1.442695, %v856_v10 }
 0x6d1   : > { %1519 = vpow2.f32 %v1259_v15 }
 0x6dc   : > { %v1518_v13 = vpop.eup %1517 }
 0x6dd   : > { %866 = vrot.lane.b32.xlu0 %v1518_v13, %s1776_s26 }
 0x6de   : > { %v1520_v16 = vpop.eup %1519 }
 0x6df   : > { %v860_v17 = vadd.f32 1.0, %v1520_v16 }
 0x6e1   : > { %885 = vperm.xlu0 %1500, %v883_v14   ;;  %1521 = vrcp.f32 %v860_v17 }
 0x6ee   : > { %v1522_v18 = vpop.eup %1521 }
 0x6ef   : > { %v864_v22 = vmul.f32 %v1522_v18, %v767_v21 }
 0x74f   : > { %v867_v19 = vpop.permute.xlu0 %866 }
 0x750   : > { %v869_v20 = vmul.f32 %v1522_v18, %v867_v19 }
 0x752   : > { %871 = vrot.lane.b32.xlu1 %v869_v20, %s1777_s16 }
 0x75c   : > { %v886_v27 = vpop.permute.xlu0 %885 }
 0x75d   : > { %vm887_vm9 = vcmp.eq.s32.totalorder %v886_v27, 1 }
 0x7c4   : > { %v872_v23 = vpop.permute.xlu1 %871 }
 0x7c5   : > { %v874_v24 = vadd.f32 %v872_v23, %v864_v22 }
 0x7c7   : > { %1523 = vtanh.f32 %v874_v24  ;;  %v889_v46 = vsel %vm887_vm9, %v874_v24, %v767_v21 }
 0x7d4   : > { %v1524_v25 = vpop.eup %1523 }
 0x7d5   : > { %877 = vrot.lane.b32.xlu1 %v1524_v25, %s1776_s26 }
 0x847   : > { %v878_v28 = vpop.permute.xlu1 %877 }
 0x848   : > { %v880_v29 = vmul.f32 %v1522_v18, %v878_v28 }
 0x84a   : > { %v888_v30 = vsel %vm887_vm9, %v880_v29, %v766_v6  ;;  %v890_v41 = vsel %vm887_vm9, %v880_v29, 0.0 }
 0x84b   : > { %903 = vrot.lane.b32.xlu1 %v888_v30, %s1777_s16 }
 0x8bd   : > { %v904_v31 = vpop.permute.xlu1 %903 }
 0x8be   : > { %1350 = vmatmul.mubr.msk.f32.vlgmr.msra.gmra.mxu0 %vm531_vm3, %v904_v31 }
 0x97e   : > { %v973_v34 = vpop.f32.mrf.mxu0 }
 0x97f   : > { %v977_v35 = vadd.f32 %v973_v34, %v901_v33 }
 0x980   : > { %v1351_v36 = vpop.f32.mrf.mxu0 }
 0x981   : > { %1525 = vtanh.f32 %v977_v35  ;;  %v1262_v42 = vmul.f32 -1.442695, %v977_v35 }
 0x983   : > { %1527 = vpow2.f32 %v1262_v42 }
 0x98e   : > { %v1526_v38 = vpop.eup %1525 }
 0x98f   : > { %987 = vrot.lane.b32.xlu0 %v1526_v38, %s1776_s26 }
 0x990   : > { %v1528_v32 = vpop.eup %1527 }
 0x991   : > { %v981_v44 = vadd.f32 1.0, %v1528_v32 }
 0x993   : > { %1006 = vperm.xlu0 %1500, %v1004_v39   ;;  %1529 = vrcp.f32 %v981_v44 }
 0x997   : > { %648 = vrot.lane.b32.xlu0 %v646_v40, %s1777_s16 }
 0x99b   : > { %892 = vrot.lane.b32.xlu0 %v890_v41, %s1777_s16 }
 0x9a0   : > { %v1530_v45 = vpop.eup %1529 }
 0x9a1   : > { %v985_v49 = vmul.f32 %v1530_v45, %v889_v46 }
 0xa01   : > { %v988_v26 = vpop.permute.xlu0 %987 }
 0xa02   : > { %v990_v47 = vmul.f32 %v1530_v45, %v988_v26 }
 0xa04   : > { %992 = vrot.lane.b32.xlu1 %v990_v47, %s1777_s16 }
 0xa0e   : > { %v1007_v48 = vpop.permute.xlu0 %1006 }
 0xa0f   : > { %vm1008_vm11 = vcmp.eq.s32.totalorder %v1007_v48, 1 }
 0xa12   : > { %v649_v43 = vpop.permute.xlu0 %648 }
 0xa13   : > { %652 = vst.msk [vmem:[%s651_s2] sm:$0xff] %vm531_vm3, %v649_v43 }
 0xa16   : > { %v893_v60 = vpop.permute.xlu0 %892 }
 0xa76   : > { %v993_v50 = vpop.permute.xlu1 %992 }
 0xa77   : > { %v995_v51 = vadd.f32 %v993_v50, %v985_v49 }
 0xa79   : > { %1531 = vtanh.f32 %v995_v51  ;;  %v1010_v52 = vsel %vm1008_vm11, %v995_v51, %v889_v46 }
 0xa86   : > { %v1532_v53 = vpop.eup %1531 }
 0xa87   : > { %998 = vrot.lane.b32.xlu1 %v1532_v53, %s1776_s26  ;;  %s1046_s26 = sadd.s32 %s2092_s17, %s2165_s8  ;;  %s2446_s8 = sand.u32 1, %s1717_s19  }
 0xa88   : > { %s1266_s11 = sshll.u32 %s1046_s26, 7 }
 0xa89   : > { %s2285_s0 = scalar_lea.hbm %s2445_s12, %s1266_s11 }
 0xa8b   : > { %770 = vrot.lane.b32.xlu1 %v768_v54, %s1777_s16 }
 0xaf9   : > { %v999_v55 = vpop.permute.xlu1 %998 }
 0xafa   : > { %v1001_v56 = vmul.f32 %v1530_v45, %v999_v55 }
 0xafc   : > { %v1011_v57 = vsel %vm1008_vm11, %v1001_v56, 0.0  ;;  %v1009_v58 = vsel %vm1008_vm11, %v1001_v56, %v888_v30 }
 0xafd   : > { %1013 = vrot.lane.b32.xlu1 %v1011_v57, %s1777_s16  ;;  %1019 = vrot.lane.b32.xlu0 %v1009_v58, %s1777_s16  ;;  %v771_v59 = vpop.permute.xlu1 %770  ;;  %s1016_s16 = scalar_lea.vmem %s2077_s9, %s1260_s22 [#allocation11]  ;;  %s1779_s9 = smov [#allocation11]  }
 0xafe   : > { %774 = vst.msk [vmem:[%s773_s15] sm:$0xff] %vm531_vm3, %v771_v59  ;;  %s1621_s21 = sshll.u32 %s1779_s9, 4  ;;  %s1622_s21 = int_to_ptr.vmem [resolvable:$false] %s1621_s21 }
 0xaff   : > { %896 = vst.msk [vmem:[%s895_s24] sm:$0xff] %vm531_vm3, %v893_v60  ;;  %s1623_s22 = scalar_lea.vmem %s1622_s21, 1024  ;;  %p1624_p13 = scmp.lt.s32.totalorder %s2290_s14, %s1622_s21 }
 0xb00   : > { %p1625_p2 = scmp.lt.s32.totalorder %s1623_s22, %s1617_s7 }
 0xb01   : > { %1024 = vrot.lane.b32.xlu1 %v1010_v52, %s1778_s3  ;;  %s2298_s3 = scalar_lea.sflag [#allocation7], %s2446_s8 }
 0xb02   : > { %p1626_p6 = por %p1625_p2, %p1624_p13 }
 0xb04   : > { %p1627_p9 = pnand %p1626_p6, %p1620_p1 }
 0xb6f   : > { %v1020_v61 = vpop.permute.xlu0 %1019  ;;  %v1014_v62 = vpop.permute.xlu1 %1013 }
 0xb70   : > { %1022 = vst.msk [vmem:[%s522_s13] sm:$0xff] %vm531_vm3, %v1020_v61  ;;  %1017 = vst.msk [vmem:[%s1016_s16] sm:$0xff] %vm531_vm3, %v1014_v62 }
 0xb71   : > { %1630 = shalt.err (!%p1627_p9)
}
 0xb72   : > { %s1631_s13 = scalar_lea.hbm %s2285_s0, 512  ;;  %s1635_s24 = scalar_lea.hbm %s2445_s12, 2048 }
 0xb73   : > { %p1632_p5 = scmp.ne.s32.totalorder %s2285_s0, %s1631_s13  ;;  %p1636_p7 = scmp.lt.s32.totalorder %s2285_s0, %s2445_s12 }
 0xb74   : > { %p1637_p11 = scmp.lt.s32.totalorder %s1635_s24, %s1631_s13 }
 0xb75   : > { %p1633_p3 = pnand %p1632_p5, %p2447_p8 }
 0xb76   : > { %p1638_p0 = por %p1637_p11, %p1636_p7 }
 0xb77   : > { %p1634_p10 = pneg %p1633_p3 }
 0xb79   : > { %p1639_p12 = pnand %p1638_p0, %p1634_p10 }
 0xb7b   : > { %1642 = shalt.err (!%p1639_p12)
}
 0xb7c   : > { %s1780_s27 = smov 128   ;;  %s1781_s10 = smov 8   ;;  %v1025_v63 = vpop.permute.xlu1 %1024 }
 0xb7d   : > { %1358 = dma.vmem_to_hbm [thread:$0]  (%p2447_p8), %s2290_s14, 512, %s2285_s0, %s2298_s3, %s1780_s27, %s1780_s27, %s1781_s10  }
 0xb7e   : > { %s2448_s16 = scalar_lea.vmem [#allocation4], %s2092_s17 }
 0xb7f   : > { %1027 = vst.msk [vmem:[%s2448_s16] sm:$0xff] %vm531_vm3, %v1025_v63 }
 0xb80 PF: > { %p1375_p4 = scmp.ge.s32.totalorder %s1765_s6, 2  ;;  %s1064_s8 = sand.u32 1, %s1713_s18  }
 0xb81   : > { %p2449_p1 = scmp.ne.s32.totalorder %s2427_s29, 0  ;;  %s1065_s7 = scalar_lea.sflag [#allocation7], %s1064_s8 }
 0xb83   : > { %p1371_p13 = pnand %p1375_p4, %p2449_p1 }
 0xb85   : > { %p1372_p2 = pneg %p1371_p13 }
 0xb87   : > { %1708 = dma.done.wait (%p1372_p2), %s1065_s7, 512  }
 0xb88   : > { %1710 = vsyncadd (%p1372_p2), %s1065_s7, 4294966784  ;;  %s24_s6 = sadd.s32 1, %s1765_s6   ;;  %s2451_s21 = sld [smem:[#allocation15_spill]] }
 0xb89   : > { %p2329_p6 = scmp.ge.s32.totalorder %s24_s6, 6   ;;  %s2452_s17 = sld [smem:[#allocation23_spill]] }
 0xb8a   : > { %s2453_s14 = sld [smem:[#allocation16_spill]]  ;;  %s2459_s18 = smov %s1717_s19 }
 0xb8b   : > { %s2454_s26 = sld [smem:[#allocation24_spill]]  ;;  %s2460_s19 = smov %s1721_s20 }
 0xb8c   : > { %s2455_s27 = sld [smem:[#allocation19_spill]]  ;;  %s2461_s20 = smov %s1988_s5 }
 0xb8d   : > { %s2456_s29 = sld [smem:[#allocation21_spill]]  ;;  %s2462_s22 = smov %s1733_s23 }
 0xb8e   : > { %s2457_s0 = sld [smem:[#allocation22_spill]]  ;;  %s2464_s24 = smov %s1741_s25 }
 0xb8f   : > { %s2463_s23 = smov %s2452_s17  ;;  %s2466_s28 = smov %s1761_s30 }
 0xb90   : > { %s2465_s25 = smov %s2453_s14  ;;  %23 = sbr.rel (!%p2329_p6) target bundleno = 17 (0x11), region = 128 }
 0xb94   : > { %s2467_s30 = smov %s2457_s0 }
 0xb95   :  { %1070 = vsyncpa [#allocation6], 1 }
 0xb96   :  { %1072 = vsyncpa [#allocation6 + $0x1], 1 }
 0xb97   :  { %1073 = vsyncpa [#allocation9], 1 }
 0xb98   :  { %1075 = vsyncpa [#allocation9 + $0x1], 1 }
 0xb99   :  { %1076 = vsyncpa [#allocation7], 1 }
 0xb9a   :  { %1078 = vsyncpa [#allocation7 + $0x1], 1 }

</bundles_post_ra>
